<compile_context>
chip_gen: v7x
topology: tpu7x:2x2x1
jax: 0.10.0
libtpu: 0.0.40
codegen_flags: <defaults>
</compile_context>

<pallas_src>
import functools

import jax
import jax.numpy as jnp
from jax import lax
from jax.experimental import pallas as pl
from jax.experimental.pallas import tpu as pltpu


# --------------------------------------------------------------------------
# Fused kernel: [step 0] conv + BN batch-stat normalization -> yhat scratch
#               [each step] BN affine + ReLU + pool + FC + softmax + PL grad
#               + gated SGD(momentum) update of the resident (Cm,4) param block
# --------------------------------------------------------------------------
def _fused_adapt_kernel(patches_t_ref, w_t_ref, wfc_ref, bfc_ref, params_in_ref,
                        logits_ref, params_ref, yhat_ref,
                        *, bsz, hw, inv_hw, threshold, lr, momentum, cm):
    step = pl.program_id(0)

    # ---- one-time precompute: frozen conv (bf16 MXU matmul, B*HW on lanes) and
    # BatchNorm batch-statistics normalization. x and the conv are fixed across
    # adaptation steps, so yhat is reused by every step from VMEM scratch.
    # (The conv bias is exactly cancelled by the batch-stat mean subtraction, so
    #  it is folded away.)
    @pl.when(step == 0)
    def _():
        y = jnp.dot(w_t_ref[...], patches_t_ref[...],
                    preferred_element_type=jnp.float32)           # (Cm, BHW) f32
        mean = jnp.mean(y, axis=1, keepdims=True)                 # (Cm, 1)
        cdev = y - mean
        var = jnp.mean(cdev * cdev, axis=1, keepdims=True)        # biased var
        yhat_ref[...] = cdev * lax.rsqrt(var + 1e-5)
        params_ref[...] = params_in_ref[...]                      # init resident state

    # ---- trainable state (packed [gamma, beta, buf_g, buf_b] along lanes)
    params = params_ref[...]                                      # (Cm, 4)
    gamma = params[:, 0:1]
    beta = params[:, 1:2]
    buf_g = params[:, 2:3]
    buf_b = params[:, 3:4]

    yhat = yhat_ref[...]                                          # (Cm, BHW)
    a = jnp.maximum(gamma * yhat + beta, 0.0)                     # BN affine + ReLU
    bhw = a.shape[1]

    # ---- global average pool per sample via an in-kernel 0/1 selector (MXU)
    samp = lax.broadcasted_iota(jnp.int32, (bsz, bhw), 0)
    pos = lax.broadcasted_iota(jnp.int32, (bsz, bhw), 1)
    lo = samp * hw
    sel_bt = ((pos >= lo) & (pos < lo + hw)).astype(jnp.float32)  # (B, BHW)
    pooled = lax.dot_general(sel_bt, a, (((1,), (1,)), ((), ())),
                             preferred_element_type=jnp.float32) * inv_hw   # (B, Cm)

    # ---- frozen classifier (bf16 MXU, classes padded to lane-aligned 1024;
    # pad columns carry a -1e30 bias so their softmax prob is exactly 0)
    wfc = wfc_ref[...]                                            # (Cm, Kp) bf16
    logits = jnp.dot(pooled.astype(jnp.bfloat16), wfc,
                     preferred_element_type=jnp.float32) + bfc_ref[...]     # (B, Kp)
    logits_ref[...] = logits   # last step's value is returned (pre-update), as in torch

    # ---- exact softmax, confidence mask, pseudo-label CE gradient w.r.t. logits
    k = logits.shape[1]
    mx = jnp.max(logits, axis=-1, keepdims=True)
    e = jnp.exp(logits - mx)
    s = e / jnp.sum(e, axis=-1, keepdims=True)                    # exact division
    maxp = jnp.max(s, axis=-1, keepdims=True)                     # (B, 1)
    maskf = (maxp > threshold).astype(jnp.float32)                # (B, 1)
    nmask = jnp.sum(maskf)                                        # scalar

    # one-hot of argmax (first occurrence, matching torch tie-breaking)
    lane = lax.broadcasted_iota(jnp.int32, (bsz, k), 1)
    first_idx = jnp.min(jnp.where(s == maxp, lane, k), axis=-1, keepdims=True)
    hot = (lane == first_idx).astype(jnp.float32)

    # loss = mean over masked of -log(s_label + 1e-10); exact gradient incl. eps
    scale = jnp.where(nmask > 0.0, 1.0 / jnp.maximum(nmask, 1.0), 0.0)
    f = maxp / (maxp + 1e-10)
    dlogits = (maskf * scale * f) * (s - hot)                     # (B, Kp) f32

    # ---- backward to the BN affine params (only trainables; yhat is gamma-free)
    dpooled_t = lax.dot_general(wfc.astype(jnp.float32), dlogits,  # f32 for grad accuracy
                                (((1,), (1,)), ((), ())),
                                preferred_element_type=jnp.float32)         # (Cm, B)
    da = dpooled_t * inv_hw                                       # grad through avg-pool
    rmask = (a > 0.0).astype(jnp.float32)                         # ReLU mask (== z>0)
    # fused per-(channel, sample) partial sums over HW: one MXU push instead of two
    stacked = jnp.concatenate([rmask * yhat, rmask], axis=0)      # (2Cm, BHW)
    s01 = lax.dot_general(stacked, sel_bt, (((1,), (1,)), ((), ())),
                          preferred_element_type=jnp.float32)     # (2Cm, B)
    dgamma = jnp.sum(da * s01[:cm], axis=1, keepdims=True)        # (Cm, 1)
    dbeta = jnp.sum(da * s01[cm:], axis=1, keepdims=True)         # (Cm, 1)

    # ---- fused SGD(lr, momentum) step, gated on `mask.sum() > 0` (no host sync)
    g = (nmask > 0.0).astype(jnp.float32)
    buf_g_new = (1.0 - g) * buf_g + g * (momentum * buf_g + dgamma)
    buf_b_new = (1.0 - g) * buf_b + g * (momentum * buf_b + dbeta)
    gamma_new = gamma - (g * lr) * buf_g_new
    beta_new = beta - (g * lr) * buf_b_new

    # single packed write of the new state (resident across grid steps)
    lane4 = lax.broadcasted_iota(jnp.int32, (cm, 4), 1)
    params_ref[...] = jnp.where(lane4 == 0, gamma_new,
                      jnp.where(lane4 == 1, beta_new,
                      jnp.where(lane4 == 2, buf_g_new, buf_b_new)))


def _call_fused(patches_t, w_t, wfc_pad, bfc_pad, params, *,
                steps, bsz, hw, threshold, lr, momentum):
    cm = w_t.shape[0]
    kcls = wfc_pad.shape[1]
    bhw = patches_t.shape[1]
    kernel = functools.partial(
        _fused_adapt_kernel,
        bsz=bsz, hw=hw, inv_hw=1.0 / float(hw), threshold=float(threshold),
        lr=float(lr), momentum=float(momentum), cm=cm)
    const = lambda s: (0, 0)   # same block every step -> inputs/outputs stay resident
    return pl.pallas_call(
        kernel,
        grid_spec=pltpu.PrefetchScalarGridSpec(
            num_scalar_prefetch=0,
            grid=(steps,),
            in_specs=[
                pl.BlockSpec(patches_t.shape, const),   # (Kp, BHW) bf16
                pl.BlockSpec(w_t.shape, const),         # (Cm, Kp)  bf16
                pl.BlockSpec(wfc_pad.shape, const),     # (Cm, Kcls) bf16
                pl.BlockSpec(bfc_pad.shape, const),     # (1, Kcls) f32
                pl.BlockSpec(params.shape, const),      # (Cm, 4)   f32
            ],
            out_specs=[
                pl.BlockSpec((bsz, kcls), const),       # padded logits
                pl.BlockSpec((cm, 4), const),           # packed new params/buffers
            ],
            scratch_shapes=[pltpu.VMEM((cm, bhw), jnp.float32)],   # yhat (reused)
        ),
        out_shape=(
            jax.ShapeDtypeStruct((bsz, kcls), jnp.float32),
            jax.ShapeDtypeStruct((cm, 4), jnp.float32),
        ),
        compiler_params=pltpu.CompilerParams(dimension_semantics=("arbitrary",)),
    )(patches_t, w_t, wfc_pad, bfc_pad, params)


# --------------------------------------------------------------------------
# Jitted forward: im2col glue ONCE per forward + single fused multi-step kernel
# --------------------------------------------------------------------------
@functools.partial(jax.jit, static_argnames=("steps", "threshold", "lr",
                                             "momentum", "num_classes"))
def _forward_adapt(x_nchw, w_t, wfc_pad, bfc_pad, params, *,
                   steps, threshold, lr, momentum, num_classes):
    b, cin, h, w = x_nchw.shape
    hw = h * w
    kin = 9 * cin
    kp = w_t.shape[1]

    # NCHW -> NHWC, pad, im2col patches (hoisted out of the steps loop: x and the
    # frozen conv do not change across adaptation steps). Transposed so B*HW lands
    # on the 128-lane axis; cast to bf16 for the MXU (f32 accumulation in-kernel).
    x_nhwc = jnp.transpose(x_nchw, (0, 2, 3, 1)).astype(jnp.float32)
    xp = jnp.pad(x_nhwc, ((0, 0), (1, 1), (1, 1), (0, 0)))
    taps = [xp[:, dy:dy + h, dx:dx + w, :] for dy in range(3) for dx in range(3)]
    patches = jnp.concatenate(taps, axis=-1).reshape(b * hw, kin)   # (BHW, 9*Cin)
    patches_t = jnp.pad(patches.T, ((0, kp - kin), (0, 0))).astype(jnp.bfloat16)

    logits_pad, params_new = _call_fused(
        patches_t, w_t, wfc_pad, bfc_pad, params,
        steps=steps, bsz=b, hw=hw, threshold=threshold, lr=lr, momentum=momentum)

    return logits_pad[:, :num_classes], params_new


# --------------------------------------------------------------------------
# PSEUDOLABEL wrapper (host-side parameter/optimizer state)
# --------------------------------------------------------------------------
class PseudoLabelPallas:
    def __init__(self, key, cin=4, cmid=8, num_classes=1000,
                 steps=1, threshold=0.0, lr=0.01, momentum=0.9):
        self.cin, self.cmid, self.num_classes = cin, cmid, num_classes
        self.steps, self.threshold = steps, threshold
        self.lr, self.momentum = lr, momentum
        k1, k2, k3 = jax.random.split(key, 3)

        # Frozen conv. Its bias is a per-channel constant added before a BatchNorm
        # using batch statistics, so the mean subtraction cancels it exactly; it is
        # folded away (no effect on outputs or gradients).
        wconv = 0.1 * jax.random.normal(k1, (3, 3, cin, cmid), jnp.float32)
        _ = 0.01 * jax.random.normal(k2, (1, cmid), jnp.float32)   # folded-away bias

        # Transposed conv weight (Cmid, 9*Cin), K padded once to a multiple of 8,
        # stored bf16 for the MXU.
        kin = 9 * cin
        kpad = ((kin + 7) // 8) * 8
        self.w_t = jnp.pad(wconv.reshape(kin, cmid).T,
                           ((0, 0), (0, kpad - kin))).astype(jnp.bfloat16)

        # Trainable BN affine + SGD momentum buffers, packed (Cmid, 4) as
        # [gamma, beta, buf_gamma, buf_beta]; buf=0 reproduces torch's
        # "first step sets buf = grad" semantics.
        self.params = jnp.concatenate(
            [jnp.ones((cmid, 1), jnp.float32), jnp.zeros((cmid, 3), jnp.float32)],
            axis=1)

        # Frozen classifier, classes padded 1000 -> 1024 once (bf16 weight); pad
        # columns get a large negative f32 bias so their softmax prob is exactly 0.
        kcls_pad = ((num_classes + 127) // 128) * 128
        wfc = 0.5 * jax.random.normal(k3, (cmid, num_classes), jnp.float32)
        self.wfc_pad = jnp.pad(wfc, ((0, 0), (0, kcls_pad - num_classes))
                               ).astype(jnp.bfloat16)
        bfc = jnp.zeros((1, num_classes), jnp.float32)
        self.bfc_pad = jnp.pad(bfc, ((0, 0), (0, kcls_pad - num_classes)),
                               constant_values=-1e30)

        # TODO(synk): episodic reset (deepcopy/restore of model & optimizer state) is
        # host-side bookkeeping with no kernel equivalent; episodic=False as in the module.

    def forward(self, x_nchw):
        logits, self.params = _forward_adapt(
            x_nchw, self.w_t, self.wfc_pad, self.bfc_pad, self.params,
            steps=self.steps, threshold=self.threshold, lr=self.lr,
            momentum=self.momentum, num_classes=self.num_classes)
        return logits


if __name__ == "__main__":
    key = jax.random.PRNGKey(0)
    kx, kp = jax.random.split(key)
    # PyTorch-style NCHW input
    x = jax.random.normal(kx, (2, 4, 16, 16), jnp.float32)

    model = PseudoLabelPallas(kp, cin=4, cmid=8, num_classes=1000,
                              steps=1, threshold=0.0)
    out = jax.block_until_ready(model.forward(x))
    assert out.shape == (2, 1000) and out.dtype == jnp.float32
    assert bool(jnp.all(jnp.isfinite(out)))

    # multi-step path: whole adaptation loop is a single kernel launch (grid=(steps,))
    model2 = PseudoLabelPallas(kp, cin=4, cmid=8, num_classes=1000,
                               steps=2, threshold=0.0)
    out2 = jax.block_until_ready(model2.forward(x))
    assert out2.shape == (2, 1000) and bool(jnp.all(jnp.isfinite(out2)))
    assert bool(jnp.all(jnp.isfinite(model2.params)))

    print("KERNEL_OK")
</pallas_src>

<mosaic_0001>
module attributes {stable_mosaic.version = 11 : i64} {
  func.func @_fused_adapt_kernel(%arg0: i32, %arg1: memref<40x512xbf16, #tpu.memory_space<vmem>>, %arg2: memref<8x40xbf16, #tpu.memory_space<vmem>>, %arg3: memref<8x1024xbf16, #tpu.memory_space<vmem>>, %arg4: memref<1x1024xf32, #tpu.memory_space<vmem>>, %arg5: memref<8x4xf32, #tpu.memory_space<vmem>>, %arg6: memref<2x1024xf32, #tpu.memory_space<vmem>>, %arg7: memref<8x4xf32, #tpu.memory_space<vmem>>, %arg8: memref<8x512xf32, #tpu.memory_space<vmem>>) attributes {dimension_semantics = [#tpu.dimension_semantics<arbitrary>], iteration_bounds = array<i64: 1>, scalar_prefetch = 0 : i64, scratch_operands = 1 : i64, tpu.core_type = #tpu.core_type<tc>, window_params = [{pipeline_mode = #tpu.pipeline_mode<synchronous>, transform_indices = @transform_0, window_bounds = array<i64: 40, 512>}, {pipeline_mode = #tpu.pipeline_mode<synchronous>, transform_indices = @transform_1, window_bounds = array<i64: 8, 40>}, {pipeline_mode = #tpu.pipeline_mode<synchronous>, transform_indices = @transform_2, window_bounds = array<i64: 8, 1024>}, {pipeline_mode = #tpu.pipeline_mode<synchronous>, transform_indices = @transform_3, window_bounds = array<i64: 1, 1024>}, {pipeline_mode = #tpu.pipeline_mode<synchronous>, transform_indices = @transform_4, window_bounds = array<i64: 8, 4>}, {pipeline_mode = #tpu.pipeline_mode<synchronous>, transform_indices = @transform_5, window_bounds = array<i64: 2, 1024>}, {pipeline_mode = #tpu.pipeline_mode<synchronous>, transform_indices = @transform_6, window_bounds = array<i64: 8, 4>}]} {
    %c0_i32 = arith.constant 0 : i32
    %0 = arith.cmpi eq, %arg0, %c0_i32 : i32
    %1 = arith.extui %0 : i1 to i32
    %c0_i32_0 = arith.constant 0 : i32
    %2 = arith.cmpi ne, %1, %c0_i32_0 : i32
    scf.if %2 {
      %c0_41 = arith.constant 0 : index
      %c0_42 = arith.constant 0 : index
      %146 = vector.load %arg2[%c0_41, %c0_42] : memref<8x40xbf16, #tpu.memory_space<vmem>>, vector<8x40xbf16>
      %c0_43 = arith.constant 0 : index
      %c0_44 = arith.constant 0 : index
      %147 = vector.load %arg1[%c0_43, %c0_44] : memref<40x512xbf16, #tpu.memory_space<vmem>>, vector<40x512xbf16>
      %cst_45 = arith.constant dense<0.000000e+00> : vector<8x512xf32>
      %148 = tpu.matmul %146, %147, %cst_45 {dimension_numbers = #tpu.dot_dimension_numbers<[1], [0], [0], [1], [0, 0, 1, 1], [], []>} : vector<8x40xbf16>, vector<40x512xbf16>, vector<8x512xf32> -> vector<8x512xf32>
      %cst_46 = arith.constant dense<0.000000e+00> : vector<8xf32>
      %149 = vector.multi_reduction <add>, %148, %cst_46 [1] : vector<8x512xf32> to vector<8xf32>
      %150 = vector.shape_cast %149 : vector<8xf32> to vector<8x1xf32>
      %cst_47 = arith.constant 5.120000e+02 : f32
      %151 = vector.broadcast %cst_47 : f32 to vector<8x1xf32>
      %152 = arith.divf %150, %151 : vector<8x1xf32>
      %153 = vector.broadcast %152 : vector<8x1xf32> to vector<8x512xf32>
      %154 = arith.subf %148, %153 : vector<8x512xf32>
      %155 = arith.mulf %154, %154 : vector<8x512xf32>
      %cst_48 = arith.constant dense<0.000000e+00> : vector<8xf32>
      %156 = vector.multi_reduction <add>, %155, %cst_48 [1] : vector<8x512xf32> to vector<8xf32>
      %157 = vector.shape_cast %156 : vector<8xf32> to vector<8x1xf32>
      %cst_49 = arith.constant 5.120000e+02 : f32
      %158 = vector.broadcast %cst_49 : f32 to vector<8x1xf32>
      %159 = arith.divf %157, %158 : vector<8x1xf32>
      %cst_50 = arith.constant 9.99999974E-6 : f32
      %160 = vector.broadcast %cst_50 : f32 to vector<8x1xf32>
      %161 = arith.addf %159, %160 : vector<8x1xf32>
      %162 = math.rsqrt %161 : vector<8x1xf32>
      %163 = vector.broadcast %162 : vector<8x1xf32> to vector<8x512xf32>
      %164 = arith.mulf %154, %163 : vector<8x512xf32>
      %c0_51 = arith.constant 0 : index
      %c0_52 = arith.constant 0 : index
      %165 = vector.load %arg8[%c0_51, %c0_52] : memref<8x512xf32, #tpu.memory_space<vmem>>, vector<8x512xf32>
      tpu.vector_store %arg8[%c0_51, %c0_52], %164 {strides = array<i32>} : memref<8x512xf32, #tpu.memory_space<vmem>>, vector<8x512xf32>,
      %c0_53 = arith.constant 0 : index
      %c0_54 = arith.constant 0 : index
      %166 = vector.load %arg5[%c0_53, %c0_54] : memref<8x4xf32, #tpu.memory_space<vmem>>, vector<8x4xf32>
      %c0_55 = arith.constant 0 : index
      %c0_56 = arith.constant 0 : index
      %167 = vector.load %arg7[%c0_55, %c0_56] : memref<8x4xf32, #tpu.memory_space<vmem>>, vector<8x4xf32>
      tpu.vector_store %arg7[%c0_55, %c0_56], %166 {strides = array<i32>} : memref<8x4xf32, #tpu.memory_space<vmem>>, vector<8x4xf32>,
    } else {
    }
    %c0 = arith.constant 0 : index
    %c0_1 = arith.constant 0 : index
    %3 = vector.load %arg7[%c0, %c0_1] : memref<8x4xf32, #tpu.memory_space<vmem>>, vector<8x4xf32>
    %4 = vector.extract_strided_slice %3 {offsets = [0, 0], sizes = [8, 1], strides = [1, 1]} : vector<8x4xf32> to vector<8x1xf32>
    %5 = vector.extract_strided_slice %3 {offsets = [0, 1], sizes = [8, 1], strides = [1, 1]} : vector<8x4xf32> to vector<8x1xf32>
    %6 = vector.extract_strided_slice %3 {offsets = [0, 2], sizes = [8, 1], strides = [1, 1]} : vector<8x4xf32> to vector<8x1xf32>
    %7 = vector.extract_strided_slice %3 {offsets = [0, 3], sizes = [8, 1], strides = [1, 1]} : vector<8x4xf32> to vector<8x1xf32>
    %c0_2 = arith.constant 0 : index
    %c0_3 = arith.constant 0 : index
    %8 = vector.load %arg8[%c0_2, %c0_3] : memref<8x512xf32, #tpu.memory_space<vmem>>, vector<8x512xf32>
    %9 = vector.broadcast %4 : vector<8x1xf32> to vector<8x512xf32>
    %10 = arith.mulf %9, %8 : vector<8x512xf32>
    %11 = vector.broadcast %5 : vector<8x1xf32> to vector<8x512xf32>
    %12 = arith.addf %10, %11 : vector<8x512xf32>
    %cst = arith.constant 0.000000e+00 : f32
    %13 = vector.broadcast %cst : f32 to vector<8x512xf32>
    %14 = arith.maximumf %12, %13 : vector<8x512xf32>
    %15 = tpu.iota {dimensions = array<i32: 0>} : vector<2x512xi32>
    %16 = tpu.iota {dimensions = array<i32: 1>} : vector<2x512xi32>
    %c256_i32 = arith.constant 256 : i32
    %17 = vector.broadcast %c256_i32 : i32 to vector<2x512xi32>
    %18 = arith.muli %15, %17 : vector<2x512xi32>
    %19 = arith.cmpi sge, %16, %18 : vector<2x512xi32>
    %c256_i32_4 = arith.constant 256 : i32
    %20 = vector.broadcast %c256_i32_4 : i32 to vector<2x512xi32>
    %21 = arith.addi %18, %20 : vector<2x512xi32>
    %22 = arith.cmpi slt, %16, %21 : vector<2x512xi32>
    %23 = arith.andi %19, %22 : vector<2x512xi1>
    %24 = arith.extui %23 : vector<2x512xi1> to vector<2x512xi32>
    %25 = arith.sitofp %24 : vector<2x512xi32> to vector<2x512xf32>
    %cst_5 = arith.constant dense<0.000000e+00> : vector<2x8xf32>
    %26 = tpu.matmul %25, %14, %cst_5 {dimension_numbers = #tpu.dot_dimension_numbers<[1], [1], [0], [0], [0, 0, 1, 0], [], []>} : vector<2x512xf32>, vector<8x512xf32>, vector<2x8xf32> -> vector<2x8xf32>
    %cst_6 = arith.constant 3.906250e-03 : f32
    %27 = vector.broadcast %cst_6 : f32 to vector<2x8xf32>
    %28 = arith.mulf %26, %27 : vector<2x8xf32>
    %c0_7 = arith.constant 0 : index
    %c0_8 = arith.constant 0 : index
    %29 = vector.load %arg3[%c0_7, %c0_8] : memref<8x1024xbf16, #tpu.memory_space<vmem>>, vector<8x1024xbf16>
    %30 = arith.truncf %28 : vector<2x8xf32> to vector<2x8xbf16>
    %cst_9 = arith.constant dense<0.000000e+00> : vector<2x1024xf32>
    %31 = tpu.matmul %30, %29, %cst_9 {dimension_numbers = #tpu.dot_dimension_numbers<[1], [0], [0], [1], [0, 0, 1, 1], [], []>} : vector<2x8xbf16>, vector<8x1024xbf16>, vector<2x1024xf32> -> vector<2x1024xf32>
    %c0_10 = arith.constant 0 : index
    %c0_11 = arith.constant 0 : index
    %32 = vector.load %arg4[%c0_10, %c0_11] : memref<1x1024xf32, #tpu.memory_space<vmem>>, vector<1x1024xf32>
    %33 = vector.broadcast %32 : vector<1x1024xf32> to vector<2x1024xf32>
    %34 = arith.addf %31, %33 : vector<2x1024xf32>
    %c0_12 = arith.constant 0 : index
    %c0_13 = arith.constant 0 : index
    %35 = vector.load %arg6[%c0_12, %c0_13] : memref<2x1024xf32, #tpu.memory_space<vmem>>, vector<2x1024xf32>
    tpu.vector_store %arg6[%c0_12, %c0_13], %34 {strides = array<i32>} : memref<2x1024xf32, #tpu.memory_space<vmem>>, vector<2x1024xf32>,
    %cst_14 = arith.constant dense<0xFF800000> : vector<2xf32>
    %36 = vector.multi_reduction <maximumf>, %34, %cst_14 [1] : vector<2x1024xf32> to vector<2xf32>
    %37 = vector.shape_cast %36 : vector<2xf32> to vector<2x1xf32>
    %38 = vector.broadcast %37 : vector<2x1xf32> to vector<2x1024xf32>
    %39 = arith.subf %34, %38 : vector<2x1024xf32>
    %40 = math.exp %39 : vector<2x1024xf32>
    %cst_15 = arith.constant dense<0.000000e+00> : vector<2xf32>
    %41 = vector.multi_reduction <add>, %40, %cst_15 [1] : vector<2x1024xf32> to vector<2xf32>
    %42 = vector.shape_cast %41 : vector<2xf32> to vector<2x1xf32>
    %43 = vector.broadcast %42 : vector<2x1xf32> to vector<2x1024xf32>
    %44 = arith.divf %40, %43 : vector<2x1024xf32>
    %cst_16 = arith.constant dense<0xFF800000> : vector<2xf32>
    %45 = vector.multi_reduction <maximumf>, %44, %cst_16 [1] : vector<2x1024xf32> to vector<2xf32>
    %46 = vector.shape_cast %45 : vector<2xf32> to vector<2x1xf32>
    %cst_17 = arith.constant 0.000000e+00 : f32
    %47 = vector.broadcast %cst_17 : f32 to vector<2x1xf32>
    %48 = arith.cmpf ogt, %46, %47 : vector<2x1xf32>
    %49 = arith.extui %48 : vector<2x1xi1> to vector<2x1xi32>
    %50 = arith.sitofp %49 : vector<2x1xi32> to vector<2x1xf32>
    %51 = vector.shape_cast %50 : vector<2x1xf32> to vector<1x2x1xf32>
    %cst_18 = arith.constant dense<0.000000e+00> : vector<1xf32>
    %52 = vector.multi_reduction <add>, %51, %cst_18 [1, 2] : vector<1x2x1xf32> to vector<1xf32>
    %53 = vector.shape_cast %52 : vector<1xf32> to vector<1x1x1xf32>
    %54 = vector.extract %53[0, 0, 0] : f32 from vector<1x1x1xf32>
    %55 = tpu.iota {dimensions = array<i32: 1>} : vector<2x1024xi32>
    %56 = vector.broadcast %46 : vector<2x1xf32> to vector<2x1024xf32>
    %57 = arith.cmpf oeq, %44, %56 : vector<2x1024xf32>
    %c1024_i32 = arith.constant 1024 : i32
    %58 = vector.broadcast %c1024_i32 : i32 to vector<2x1024xi32>
    %59 = arith.select %57, %55, %58 : vector<2x1024xi1>, vector<2x1024xi32>
    %cst_19 = arith.constant dense<2147483647> : vector<2xi32>
    %60 = vector.multi_reduction <minsi>, %59, %cst_19 [1] : vector<2x1024xi32> to vector<2xi32>
    %61 = vector.shape_cast %60 : vector<2xi32> to vector<2x1xi32>
    %62 = vector.broadcast %61 : vector<2x1xi32> to vector<2x1024xi32>
    %63 = arith.cmpi eq, %55, %62 : vector<2x1024xi32>
    %64 = arith.extui %63 : vector<2x1024xi1> to vector<2x1024xi32>
    %65 = arith.sitofp %64 : vector<2x1024xi32> to vector<2x1024xf32>
    %cst_20 = arith.constant 0.000000e+00 : f32
    %66 = arith.cmpf ogt, %54, %cst_20 : f32
    %cst_21 = arith.constant 1.000000e+00 : f32
    %67 = arith.maximumf %54, %cst_21 : f32
    %cst_22 = arith.constant 1.000000e+00 : f32
    %68 = arith.divf %cst_22, %67 : f32
    %cst_23 = arith.constant 0.000000e+00 : f32
    %69 = arith.select %66, %68, %cst_23 : f32
    %cst_24 = arith.constant 1.000000e-10 : f32
    %70 = vector.broadcast %cst_24 : f32 to vector<2x1xf32>
    %71 = arith.addf %46, %70 : vector<2x1xf32>
    %72 = arith.divf %46, %71 : vector<2x1xf32>
    %73 = vector.broadcast %69 : f32 to vector<2x1xf32>
    %74 = arith.mulf %50, %73 : vector<2x1xf32>
    %75 = arith.mulf %74, %72 : vector<2x1xf32>
    %76 = arith.subf %44, %65 : vector<2x1024xf32>
    %77 = vector.broadcast %75 : vector<2x1xf32> to vector<2x1024xf32>
    %78 = arith.mulf %77, %76 : vector<2x1024xf32>
    %79 = arith.extf %29 : vector<8x1024xbf16> to vector<8x1024xf32>
    %cst_25 = arith.constant dense<0.000000e+00> : vector<8x2xf32>
    %80 = tpu.matmul %79, %78, %cst_25 {dimension_numbers = #tpu.dot_dimension_numbers<[1], [1], [0], [0], [0, 0, 1, 0], [], []>} : vector<8x1024xf32>, vector<2x1024xf32>, vector<8x2xf32> -> vector<8x2xf32>
    %cst_26 = arith.constant 3.906250e-03 : f32
    %81 = vector.broadcast %cst_26 : f32 to vector<8x2xf32>
    %82 = arith.mulf %80, %81 : vector<8x2xf32>
    %cst_27 = arith.constant 0.000000e+00 : f32
    %83 = vector.broadcast %cst_27 : f32 to vector<8x512xf32>
    %84 = arith.cmpf ogt, %14, %83 : vector<8x512xf32>
    %85 = arith.extui %84 : vector<8x512xi1> to vector<8x512xi32>
    %86 = arith.sitofp %85 : vector<8x512xi32> to vector<8x512xf32>
    %87 = arith.mulf %86, %8 : vector<8x512xf32>
    %88 = tpu.concatenate %87, %86 in 0 : vector<8x512xf32>, vector<8x512xf32> -> vector<16x512xf32>
    %cst_28 = arith.constant dense<0.000000e+00> : vector<16x2xf32>
    %89 = tpu.matmul %88, %25, %cst_28 {dimension_numbers = #tpu.dot_dimension_numbers<[1], [1], [0], [0], [0, 0, 1, 0], [], []>} : vector<16x512xf32>, vector<2x512xf32>, vector<16x2xf32> -> vector<16x2xf32>
    %90 = vector.extract_strided_slice %89 {offsets = [0, 0], sizes = [8, 2], strides = [1, 1]} : vector<16x2xf32> to vector<8x2xf32>
    %91 = arith.mulf %82, %90 : vector<8x2xf32>
    %cst_29 = arith.constant dense<0.000000e+00> : vector<8xf32>
    %92 = vector.multi_reduction <add>, %91, %cst_29 [1] : vector<8x2xf32> to vector<8xf32>
    %93 = vector.shape_cast %92 : vector<8xf32> to vector<8x1xf32>
    %94 = vector.extract_strided_slice %89 {offsets = [8, 0], sizes = [8, 2], strides = [1, 1]} : vector<16x2xf32> to vector<8x2xf32>
    %95 = arith.mulf %82, %94 : vector<8x2xf32>
    %cst_30 = arith.constant dense<0.000000e+00> : vector<8xf32>
    %96 = vector.multi_reduction <add>, %95, %cst_30 [1] : vector<8x2xf32> to vector<8xf32>
    %97 = vector.shape_cast %96 : vector<8xf32> to vector<8x1xf32>
    %cst_31 = arith.constant 0.000000e+00 : f32
    %98 = arith.cmpf ogt, %54, %cst_31 : f32
    %99 = arith.extui %98 : i1 to i32
    %100 = arith.sitofp %99 : i32 to f32
    %cst_32 = arith.constant 1.000000e+00 : f32
    %101 = arith.subf %cst_32, %100 : f32
    %102 = vector.broadcast %101 : f32 to vector<8x1xf32>
    %103 = arith.mulf %102, %6 : vector<8x1xf32>
    %cst_33 = arith.constant 0.899999976 : f32
    %104 = vector.broadcast %cst_33 : f32 to vector<8x1xf32>
    %105 = arith.mulf %104, %6 : vector<8x1xf32>
    %106 = arith.addf %105, %93 : vector<8x1xf32>
    %107 = vector.broadcast %100 : f32 to vector<8x1xf32>
    %108 = arith.mulf %107, %106 : vector<8x1xf32>
    %109 = arith.addf %103, %108 : vector<8x1xf32>
    %cst_34 = arith.constant 1.000000e+00 : f32
    %110 = arith.subf %cst_34, %100 : f32
    %111 = vector.broadcast %110 : f32 to vector<8x1xf32>
    %112 = arith.mulf %111, %7 : vector<8x1xf32>
    %cst_35 = arith.constant 0.899999976 : f32
    %113 = vector.broadcast %cst_35 : f32 to vector<8x1xf32>
    %114 = arith.mulf %113, %7 : vector<8x1xf32>
    %115 = arith.addf %114, %97 : vector<8x1xf32>
    %116 = vector.broadcast %100 : f32 to vector<8x1xf32>
    %117 = arith.mulf %116, %115 : vector<8x1xf32>
    %118 = arith.addf %112, %117 : vector<8x1xf32>
    %cst_36 = arith.constant 0.00999999977 : f32
    %119 = arith.mulf %100, %cst_36 : f32
    %120 = vector.broadcast %119 : f32 to vector<8x1xf32>
    %121 = arith.mulf %120, %109 : vector<8x1xf32>
    %122 = arith.subf %4, %121 : vector<8x1xf32>
    %cst_37 = arith.constant 0.00999999977 : f32
    %123 = arith.mulf %100, %cst_37 : f32
    %124 = vector.broadcast %123 : f32 to vector<8x1xf32>
    %125 = arith.mulf %124, %118 : vector<8x1xf32>
    %126 = arith.subf %5, %125 : vector<8x1xf32>
    %127 = tpu.iota {dimensions = array<i32: 1>} : vector<8x4xi32>
    %c0_i32_38 = arith.constant 0 : i32
    %128 = vector.broadcast %c0_i32_38 : i32 to vector<8x4xi32>
    %129 = arith.cmpi eq, %127, %128 : vector<8x4xi32>
    %c1_i32 = arith.constant 1 : i32
    %130 = vector.broadcast %c1_i32 : i32 to vector<8x4xi32>
    %131 = arith.cmpi eq, %127, %130 : vector<8x4xi32>
    %c2_i32 = arith.constant 2 : i32
    %132 = vector.broadcast %c2_i32 : i32 to vector<8x4xi32>
    %133 = arith.cmpi eq, %127, %132 : vector<8x4xi32>
    %134 = vector.shape_cast %109 : vector<8x1xf32> to vector<8x1xf32>
    %135 = vector.broadcast %134 : vector<8x1xf32> to vector<8x4xf32>
    %136 = vector.shape_cast %118 : vector<8x1xf32> to vector<8x1xf32>
    %137 = vector.broadcast %136 : vector<8x1xf32> to vector<8x4xf32>
    %138 = arith.select %133, %135, %137 : vector<8x4xi1>, vector<8x4xf32>
    %139 = vector.shape_cast %126 : vector<8x1xf32> to vector<8x1xf32>
    %140 = vector.broadcast %139 : vector<8x1xf32> to vector<8x4xf32>
    %141 = arith.select %131, %140, %138 : vector<8x4xi1>, vector<8x4xf32>
    %142 = vector.shape_cast %122 : vector<8x1xf32> to vector<8x1xf32>
    %143 = vector.broadcast %142 : vector<8x1xf32> to vector<8x4xf32>
    %144 = arith.select %129, %143, %141 : vector<8x4xi1>, vector<8x4xf32>
    %c0_39 = arith.constant 0 : index
    %c0_40 = arith.constant 0 : index
    %145 = vector.load %arg7[%c0_39, %c0_40] : memref<8x4xf32, #tpu.memory_space<vmem>>, vector<8x4xf32>
    tpu.vector_store %arg7[%c0_39, %c0_40], %144 {strides = array<i32>} : memref<8x4xf32, #tpu.memory_space<vmem>>, vector<8x4xf32>,
    return
  }
  func.func @transform_0(%arg0: i32) -> (i32, i32) {
    %c0_i32 = arith.constant 0 : i32
    %c0_i32_0 = arith.constant 0 : i32
    %c0_i32_1 = arith.constant 0 : i32
    return %c0_i32, %c0_i32_0 : i32, i32
  }
  func.func @transform_1(%arg0: i32) -> (i32, i32) {
    %c0_i32 = arith.constant 0 : i32
    %c0_i32_0 = arith.constant 0 : i32
    %c0_i32_1 = arith.constant 0 : i32
    return %c0_i32, %c0_i32_0 : i32, i32
  }
  func.func @transform_2(%arg0: i32) -> (i32, i32) {
    %c0_i32 = arith.constant 0 : i32
    %c0_i32_0 = arith.constant 0 : i32
    %c0_i32_1 = arith.constant 0 : i32
    return %c0_i32, %c0_i32_0 : i32, i32
  }
  func.func @transform_3(%arg0: i32) -> (i32, i32) {
    %c0_i32 = arith.constant 0 : i32
    %c0_i32_0 = arith.constant 0 : i32
    %c0_i32_1 = arith.constant 0 : i32
    return %c0_i32, %c0_i32_0 : i32, i32
  }
  func.func @transform_4(%arg0: i32) -> (i32, i32) {
    %c0_i32 = arith.constant 0 : i32
    %c0_i32_0 = arith.constant 0 : i32
    %c0_i32_1 = arith.constant 0 : i32
    return %c0_i32, %c0_i32_0 : i32, i32
  }
  func.func @transform_5(%arg0: i32) -> (i32, i32) {
    %c0_i32 = arith.constant 0 : i32
    %c0_i32_0 = arith.constant 0 : i32
    %c0_i32_1 = arith.constant 0 : i32
    return %c0_i32, %c0_i32_0 : i32, i32
  }
  func.func @transform_6(%arg0: i32) -> (i32, i32) {
    %c0_i32 = arith.constant 0 : i32
    %c0_i32_0 = arith.constant 0 : i32
    %c0_i32_1 = arith.constant 0 : i32
    return %c0_i32, %c0_i32_0 : i32, i32
  }
}

</mosaic_0001>

<bundles_post_ra>
// kernel: _forward_adapt.1
= control target key start
LH: loop header
LB: loop body
LE: loop exit
PB: predicated region body
PF: predicated region fallthrough
CT: control target
= control target key end

     0   :  { %v1632_v2 = vmov 0   ;;  %vm93_vm0 = vcmask 1043456   ;;  %s2087_s0 = inlined_call_operand.vmem [shape: bf16[40,512], index: 0, kind: input, shape index: {}]   ;;  %s2088_s1 = inlined_call_operand.vmem [shape: bf16[8,40], index: 1, kind: input, shape index: {}]   ;;  %s2089_s2 = inlined_call_operand.vmem [shape: bf16[8,1024], index: 2, kind: input, shape index: {}]   ;;  %s2090_s3 = inlined_call_operand.vmem [shape: f32[1,1024], index: 3, kind: input, shape index: {}]   ;;  %s2091_s4 = inlined_call_operand.vmem [shape: f32[8,4], index: 4, kind: input, shape index: {}]   ;;  %s2092_s5 = inlined_call_operand.hbm [shape: f32[2,1024], index: 5, kind: output, shape index: {0}]   ;;  %s2093_s6 = inlined_call_operand.vmem [shape: f32[8,4], index: 6, kind: output, shape index: {1}]  }
   0x1   :  { %v1560_v0 = vld [vmem:[%s2087_s0 + $0x4] ss:$16 sps:$4 sm:$0xff]   ;;  %v1562_v1 = vld [vmem:[%s2087_s0 + $0xc] ss:$16 sps:$4 sm:$0xff]   ;;  %138 = vmatprep.mubr.bf16.mxu0 %v1632_v2  ;;  %179 = vmatprep.mubr.bf16.mxu1 %v1632_v2  ;;  %v1564_v3 = vld [vmem:[%s2087_s0] ss:$16 sps:$4 sm:$0xff]  }
   0x2   :  { %106 = vmatprep.subr.bf16.mxu0 %v1560_v0  ;;  %v1565_v4 = vld [vmem:[%s2087_s0 + $0x8] ss:$16 sps:$4 sm:$0xff]   ;;  %1554 = vset.pattern.permute.xlu1 %v1632_v2  ;;  %v1566_v5 = vld [vmem:[%s2087_s0 + $0x24] ss:$16 sps:$4 sm:$0xff]   ;;  %v1568_v6 = vld [vmem:[%s2087_s0 + $0x2c] ss:$16 sps:$4 sm:$0xff]  }
   0x3   :  { %147 = vmatprep.subr.bf16.mxu1 %v1562_v1  ;;  %107 = vmatpush1.bf16.msra.mxu0 %v1564_v3  ;;  %v1570_v7 = vld [vmem:[%s2087_s0 + $0x20] ss:$16 sps:$4 sm:$0xff]   ;;  %v1571_v8 = vld [vmem:[%s2087_s0 + $0x28] ss:$16 sps:$4 sm:$0xff]  }
   0x4   :  { %148 = vmatpush1.bf16.msra.mxu1 %v1565_v4  ;;  %108 = vmatprep.subr.bf16.mxu0 %v1566_v5  ;;  %v37_v9 = vld [vmem:[%s2087_s0 + $0x40] sm:$0xff]  ;;  %v38_v10 = vld [vmem:[%s2087_s0 + $0x48] sm:$0xff] }
   0x5   :  { %149 = vmatprep.subr.bf16.mxu1 %v1568_v6  ;;  %v1477_v11 = vcombine.high %v37_v9, %v37_v9  ;;  %v1479_v12 = vcombine.high %v38_v10, %v38_v10  ;;  %v1476_v13 = vcombine.low %v37_v9, %v37_v9  ;;  %v1478_v14 = vcombine.low %v38_v10, %v38_v10 }
   0x6   :  { %12 = vsyncpa [#allocation4], 0  ;;  %v28_v17 = vld [vmem:[%s2088_s1] sm:$0xf]  ;;  %vm89_vm1 = vcmask 326656   ;;  %vm220_vm2 = vcmask 31744   ;;  %v248_v45 = vlaneseq }
   0x7   :  { %109 = vmatpush1.bf16.msra.mxu0 %v1570_v7  ;;  %v95_v15 = vsel %vm93_vm0, %v1476_v13, 0  ;;  %v101_v16 = vsel %vm93_vm0, %v1478_v14, 0  ;;  %v219_v29 = vld [vmem:[%s2091_s4] sm:$0xff]  ;;  %v1633_v31 = vmov 1   ;;  %v1634_v54 = vmov 1.0   ;;  %s1637_s7 = smov 1.0  }
   0x8   :  { %150 = vmatpush1.bf16.msra.mxu1 %v1571_v8  ;;  %1480 = vmatprep.subr.msk.bf16.mxu0 %vm93_vm0, %v1477_v11  ;;  %221 = vst.msk [vmem:[%s2093_s6] sm:$0xff] %vm220_vm2, %v219_v29  ;;  %v1732_v46 = vshrl.u32 %v248_v45, 7  ;;  %v1734_v47 = vand.u32 127, %v248_v45  ;;  %v423_v56 = vld [vmem:[%s2090_s3] sm:$0xff]  ;;  %s1640_s14 = smov 126   ;;  %s1641_s15 = smov [#allocation3]  }
   0x9   :  { %1482 = vmatprep.subr.msk.bf16.mxu1 %vm93_vm0, %v1479_v12  ;;  %s1456_s16 = sshll.u32 %s1641_s15, 4  ;;  %s1457_s16 = int_to_ptr.vmem [resolvable:$true] %s1456_s16 }
   0xa   :  { %v255_v48 = vmul.u32 256, %v1732_v46  ;;  %v1738_v49 = vadd.s32 128, %v1734_v47  ;;  %v1741_v51 = vadd.s32 384, %v1734_v47  ;;  %v1744_v52 = vadd.s32 256, %v1734_v47  ;;  %s1608_s17 = scalar_lea.vmem %s1457_s16, 256  ;;  %p1613_p2 = scmp.lt.s32.totalorder %s1457_s16, %s1457_s16 }
   0xb   :  { %111 = vmatpush1.bf16.msra.mxu0 %v95_v15  ;;  %v427_v53 = vsub.s32 0, %v1732_v46  ;;  %v435_v55 = vsub.s32 2, %v1732_v46  ;;  %v431_v57 = vsub.s32 1, %v1732_v46  ;;  %p1609_p1 = scmp.ne.s32.totalorder %s1457_s16, %s1608_s17  ;;  %p1614_p3 = scmp.lt.s32.totalorder %s1608_s17, %s1608_s17 }
   0xc   :  { %152 = vmatpush1.bf16.msra.mxu1 %v101_v16  ;;  %v260_v50 = vadd.s32 256, %v255_v48  ;;  %vm257_vm3 = vcmp.ge.s32.totalorder %v1738_v49, %v255_v48  ;;  %vm259_vm5 = vcmp.ge.s32.totalorder %v1741_v51, %v255_v48  ;;  %vm256_vm8 = vcmp.ge.s32.totalorder %v1734_v47, %v255_v48 }
   0xd   :  { %vm258_vm10 = vcmp.ge.s32.totalorder %v1744_v52, %v255_v48  ;;  %p1615_p4 = por %p1614_p3, %p1613_p2 }
   0xe   :  { %1481 = vmatmul.mubr.msk.bf16.vlgmr.msra.gmra.mrb[0].mxu0 %vm89_vm1, %v28_v17  ;;  %vm262_vm4 = vcmp.lt.s32.totalorder %v1738_v49, %v260_v50  ;;  %vm264_vm6 = vcmp.lt.s32.totalorder %v1741_v51, %v260_v50  ;;  %vm261_vm9 = vcmp.lt.s32.totalorder %v1734_v47, %v260_v50  ;;  %vm263_vm12 = vcmp.lt.s32.totalorder %v1744_v52, %v260_v50 }
   0xf   :  { %1483 = vmatmul.mubr.msk.bf16.vlgmr.msra.gmra.mrb[0].mxu1 %vm89_vm1, %v28_v17  ;;  %v1727_v30 = vld [vmem:[%s2093_s6] sm:$0xff]  ;;  %vm1750_vm7 = vmand %vm257_vm3, %vm262_vm4  ;;  %v447_v17 = vsub.s32 5, %v1732_v46  ;;  %p1616_p5 = pnand %p1615_p4, %p1609_p1 }
  0x10   :  { %229 = vperm.xlu1 %1554, %v1727_v30   ;;  %1488 = vmatprep.mubr.msk.f32.mxu1 %vm1750_vm7, %v1634_v54  ;;  %vm1760_vm11 = vmand %vm259_vm5, %vm264_vm6  ;;  %vm485_vm5 = vcmask 64512   ;;  %vm812_vm6 = vcmask 1024  }
  0x11   :  { %1490 = vmatprep.mubr.msk.f32.mxu0 %vm1760_vm11, %v1634_v54  ;;  %vm1768_vm13 = vmand %vm256_vm8, %vm261_vm9 }
  0x12   :  { %vm1772_vm14 = vmand %vm258_vm10, %vm263_vm12 }
  0x14   :  { %1555 = vset.pattern.permute.xlu1 %v1633_v31 }
  0x15   :  { %237 = vperm.xlu1 %1555, %v1727_v30  }
  0x8f   :  { %v230_v61 = vpop.permute.xlu1 %229 }
  0x94   :  { %v238_v4 = vpop.permute.xlu1 %237 }
  0xe1   :  { %v140_v18 = vpop.f32.mrb[0].mxu0 }
  0xe2   :  { %v181_v19 = vpop.f32.mrb[0].mxu1  ;;  %v142_v20 = vpop.f32.mrb[1].mxu0 }
  0xe3   :  { %v183_v21 = vpop.f32.mrb[1].mxu1  ;;  %v188_v22 = vadd.f32 %v142_v20, %v140_v18  ;;  %v144_v23 = vpop.f32.mrb[2].mxu0 }
  0xe4   :  { %v185_v24 = vpop.f32.mrb[2].mxu1  ;;  %v145_v25 = vpop.f32.mrb[3].mxu0 }
  0xe5   :  { %v186_v26 = vpop.f32.mrb[3].mxu1  ;;  %v189_v27 = vadd.f32 %v188_v22, %v181_v19 }
  0xe7   :  { %v190_v28 = vadd.f32 %v189_v27, %v183_v21 }
  0xe9   :  { %191 = vadd.xlane.f32.xlu0 %v190_v28 }
 0x176   :  { %v192_v32 = vpop.xlane.xlu0 %191 }
 0x177   :  { %v194_v33 = vmul.f32 0.001953125, %v192_v32  ;;  %v1815_v32 = vld [vmem:[%s2089_s2] sm:$0xff] }
 0x179   :  { %v195_v34 = vsub.f32 %v140_v18, %v194_v33  ;;  %v196_v35 = vsub.f32 %v142_v20, %v194_v33  ;;  %v197_v36 = vsub.f32 %v181_v19, %v194_v33  ;;  %v198_v37 = vsub.f32 %v183_v21, %v194_v33  ;;  %v1820_v33 = vld [vmem:[%s2089_s2 + $0x8] sm:$0xff] }
 0x17a   :  { %v1635_v21 = vmov 0.0  }
 0x17b   :  { %v199_v38 = vmul.f32 %v195_v34, %v195_v34  ;;  %v200_v39 = vmul.f32 %v196_v35, %v196_v35  ;;  %v201_v40 = vmul.f32 %v197_v36, %v197_v36  ;;  %v202_v42 = vmul.f32 %v198_v37, %v198_v37 }
 0x17d   :  { %v203_v41 = vadd.f32 %v200_v39, %v199_v38 }
 0x17f   :  { %v204_v43 = vadd.f32 %v203_v41, %v201_v40  ;;  %v1837_v40 = vld [vmem:[%s2089_s2 + $0x18] sm:$0xff]  ;;  %v1842_v41 = vld [vmem:[%s2089_s2 + $0x10] sm:$0xff] }
 0x181   :  { %v205_v44 = vadd.f32 %v204_v43, %v202_v42  ;;  %v1499_v42 = vcombine.high %v1837_v40, %v1837_v40  ;;  %v1497_v43 = vcombine.high %v1842_v41, %v1842_v41 }
 0x183   :  { %206 = vadd.xlane.f32.xlu0 %v205_v44 }
 0x210   :  { %v207_v58 = vpop.xlane.xlu0 %206 }
 0x211   :  { %v208_v59 = vmul.f32 0.001953125, %v207_v58 }
 0x213   :  { %v209_v60 = vadd.f32 1e-05, %v208_v59  ;;  %v1498_v59 = vcombine.low %v1837_v40, %v1837_v40 }
 0x215   :  { %1584 = vrsqrt.f32 %v209_v60  ;;  %v1496_v60 = vcombine.low %v1842_v41, %v1842_v41 }
 0x21f   :  { %v1585_v62 = vpop.eup %1584 }
 0x220   :  { %v211_v63 = vmul.f32 %v1585_v62, %v195_v34  ;;  %v212_v0 = vmul.f32 %v1585_v62, %v196_v35  ;;  %v213_v1 = vmul.f32 %v1585_v62, %v197_v36  ;;  %v214_v3 = vmul.f32 %v1585_v62, %v198_v37 }
 0x221   :  { %v1493_v34 = vcombine.high %v1815_v32, %v1815_v32  ;;  %v1495_v35 = vcombine.high %v1820_v33, %v1820_v33  ;;  %v1492_v36 = vcombine.low %v1815_v32, %v1815_v32  ;;  %v1494_v37 = vcombine.low %v1820_v33, %v1820_v33 }
 0x222   :  { %v232_v5 = vmul.f32 %v230_v61, %v211_v63  ;;  %v233_v6 = vmul.f32 %v230_v61, %v212_v0  ;;  %v234_v7 = vmul.f32 %v230_v61, %v213_v1  ;;  %v235_v8 = vmul.f32 %v230_v61, %v214_v3 }
 0x223   :  { %v491_v38 = vsel %vm93_vm0, %v1492_v36, 0  ;;  %v497_v39 = vsel %vm93_vm0, %v1494_v37, 0 }
 0x224   :  { %v240_v9 = vadd.f32 %v238_v4, %v232_v5  ;;  %v242_v10 = vadd.f32 %v238_v4, %v234_v7  ;;  %v241_v11 = vadd.f32 %v238_v4, %v233_v6  ;;  %v243_v12 = vadd.f32 %v238_v4, %v235_v8 }
 0x225   :  { %v428_v5 = vrot.slane %v423_v56, %v427_v53  ;;  %v436_v6 = vrot.slane %v423_v56, %v435_v55  ;;  %v432_v7 = vrot.slane %v423_v56, %v431_v57 }
 0x226   :  { %v244_v13 = vmax.f32 %v240_v9, 0.0  ;;  %v246_v14 = vmax.f32 %v242_v10, 0.0  ;;  %v245_v15 = vmax.f32 %v241_v11, 0.0  ;;  %v247_v16 = vmax.f32 %v243_v12, 0.0 }
 0x227   :  { %v443_v11 = vsub.s32 4, %v1732_v46 }
 0x228   :  { %vm1776_vm15 = vcmp.gt.f32.partialorder %v244_v13, 0.0  ;;  %vm1780_vm1 = vcmp.gt.f32.partialorder %v246_v14, 0.0  ;;  %277 = vmatprep.subr.mxu1 %v245_v15  ;;  %347 = vmatprep.subr.mxu0 %v247_v16  ;;  %vm1784_vm3 = vcmp.gt.f32.partialorder %v245_v15, 0.0  ;;  %vm1788_vm4 = vcmp.gt.f32.partialorder %v247_v16, 0.0 }
 0x229   :  { %v1519_v22 = vsel %vm1780_vm1, 1.0, %v1635_v21  ;;  %278 = vmatpush1.xpose.msra.mxu1 %v244_v13  ;;  %348 = vmatpush1.xpose.msra.mxu0 %v246_v14  ;;  %v1518_v23 = vsel %vm1784_vm3, 1.0, %v1635_v21  ;;  %v1517_v24 = vsel %vm1776_vm15, 1.0, %v1635_v21  ;;  %v1520_v25 = vsel %vm1788_vm4, 1.0, %v1635_v21 }
 0x22a   :  { %v1234_v26 = vmul.f32 %v1519_v22, %v213_v1  ;;  %v1233_v27 = vmul.f32 %v1518_v23, %v212_v0  ;;  %v1232_v28 = vmul.f32 %v1517_v24, %v211_v63  ;;  %v1235_v29 = vmul.f32 %v1520_v25, %v214_v3  ;;  %1500 = vmatprep.subr.msk.bf16.mxu1 %vm93_vm0, %v1493_v34 }
 0x22b   :  { %1502 = vmatprep.subr.msk.bf16.mxu0 %vm93_vm0, %v1495_v35  ;;  %v509_v63 = vsel %vm93_vm0, %v1498_v59, 0  ;;  %v503_v0 = vsel %vm93_vm0, %v1496_v60, 0  ;;  %v439_v1 = vsub.s32 3, %v1732_v46  ;;  %v1636_v3 = vmov 1983009808  }
 0x22c   :  { %1489 = vmatmul.mubr.msk.f32.vlgmr.msra.gmra.mrb[4].mxu1 %vm1768_vm13, %v1634_v54  ;;  %1491 = vmatmul.mubr.msk.f32.vlgmr.msra.gmra.mrb[4].mxu0 %vm1772_vm14, %v1634_v54  ;;  %v689_v4 = vunpack.c.l.s4 %v1636_v3  ;;  %v451_v16 = vsub.s32 6, %v1732_v46  ;;  %v455_v23 = vsub.s32 7, %v1732_v46  ;;  %v448_v35 = vrot.slane %v423_v56, %v447_v17 }
 0x22d   :  { %546 = vmatprep.mubr.bf16.mxu1 %v1632_v2  ;;  %587 = vmatprep.mubr.bf16.mxu0 %v1632_v2  ;;  %v440_v8 = vrot.slane %v423_v56, %v439_v1 }
 0x22e   :  { %515 = vmatpush1.bf16.msra.mxu1 %v491_v38  ;;  %556 = vmatpush1.bf16.msra.mxu0 %v497_v39  ;;  %v690_v9 = vunpack.c.0.s8 %v689_v4  ;;  %v452_v34 = vrot.slane %v423_v56, %v451_v16  ;;  %v456_v36 = vrot.slane %v423_v56, %v455_v23 }
 0x22f   :  { %1506 = vmatprep.subr.msk.bf16.mxu0 %vm93_vm0, %v1499_v42  ;;  %1504 = vmatprep.subr.msk.bf16.mxu1 %vm93_vm0, %v1497_v43  ;;  %vm724_vm0 = vcmask 1041408  }
 0x230   :  { %v693_v24 = vsub.s32 %v690_v9, %v1732_v46 }
 0x2ff   :  { %v343_v44 = vpop.f32.mrb[4].mxu1  ;;  %v413_v45 = vpop.f32.mrb[4].mxu0 }
 0x300   :  { %v414_v48 = vadd.f32 %v413_v45, %v343_v44  ;;  %v345_v50 = vpop.f32.mrb[5].mxu1  ;;  %v415_v58 = vpop.f32.mrb[5].mxu0 }
 0x302   :  { %v417_v61 = vmul.f32 0.00390625, %v414_v48 }
 0x304   :  { %v422_v62 = vpack.c.bf16 %v417_v61, %v417_v61 }
 0x306   :  { %1501 = vmatmul.mubr.msk.bf16.vlgmr.msra.gmra.mrb[8].mxu1 %vm485_vm5, %v422_v62  ;;  %1503 = vmatmul.mubr.msk.bf16.vlgmr.msra.gmra.mrb[8].mxu0 %vm485_vm5, %v422_v62 }
 0x307   :  { %638 = vmatpush1.bf16.msra.mxu0 %v509_v63  ;;  %597 = vmatpush1.bf16.msra.mxu1 %v503_v0 }
 0x308   :  { %628 = vmatprep.mubr.bf16.mxu1 %v1632_v2  ;;  %669 = vmatprep.mubr.bf16.mxu0 %v1632_v2 }
 0x309   :  { %1521 = vmatprep.subr.msk.mxu0 %vm1750_vm7, %v1634_v54 }
 0x30e   :  { %1505 = vmatmul.mubr.msk.bf16.vlgmr.msra.gmra.mrb[12].mxu1 %vm485_vm5, %v422_v62  ;;  %1507 = vmatmul.mubr.msk.bf16.vlgmr.msra.gmra.mrb[12].mxu0 %vm485_vm5, %v422_v62 }
 0x30f   :  { %1300 = vmatprep.mubr.f32.mxu0 %v1233_v27 }
 0x310   :  { %1522 = vmatpush1.xpose.msk.msra.mxu0 %vm1768_vm13, %v1634_v54 }
 0x311   :  { %1525 = vmatprep.subr.msk.mxu0 %vm1760_vm11, %v1634_v54 }
 0x316   :  { %1301 = vmatmul.mubr.f32.vlgmr.msra.gmra.mrb[6].mxu0 %v1232_v28 }
 0x317   :  { %1523 = vmatprep.mubr.msk.f32.mxu0 %vm1784_vm3, %v1634_v54  ;;  %1526 = vmatpush1.xpose.msk.msra.mxu0 %vm1772_vm14, %v1634_v54 }
 0x31a   :  { %1524 = vmatmul.mubr.msk.f32.gmra.mrb[16].mxu0 %vm1776_vm15, %v1634_v54 }
 0x31b   :  { %1375 = vmatprep.mubr.f32.mxu0 %v1235_v29  ;;  %v444_v29 = vrot.slane %v423_v56, %v443_v11 }
 0x31e   :  { %1376 = vmatmul.mubr.f32.vlgmr.msra.gmra.mrb[6].mxu0 %v1234_v26 }
 0x31f   :  { %1527 = vmatprep.mubr.msk.f32.mxu0 %vm1788_vm4, %v1634_v54 }
 0x322   :  { %1528 = vmatmul.mubr.msk.f32.gmra.mrb[16].mxu0 %vm1780_vm1, %v1634_v54 }
 0x3d9   :  { %v548_v54 = vpop.f32.mrb[8].mxu1  ;;  %v589_v10 = vpop.f32.mrb[8].mxu0 }
 0x3da   :  { %v1890_v12 = vadd.f32 %v548_v54, %v428_v5  ;;  %v1892_v13 = vadd.f32 %v589_v10, %v436_v6  ;;  %v550_v14 = vpop.f32.mrb[9].mxu1  ;;  %v591_v15 = vpop.f32.mrb[9].mxu0 }
 0x3db   :  { %v1896_v18 = vadd.f32 %v550_v14, %v432_v7  ;;  %v1898_v19 = vadd.f32 %v591_v15, %v440_v8  ;;  %v552_v20 = vpop.f32.mrb[10].mxu1  ;;  %v593_v22 = vpop.f32.mrb[10].mxu0 }
 0x3dc   :  { %v553_v25 = vpop.f32.mrb[11].mxu1  ;;  %v594_v26 = vpop.f32.mrb[11].mxu0  ;;  %v725_v50 = vsel %vm724_vm0, %v1890_v12, -inf  ;;  %v727_v58 = vsel %vm724_vm0, %v1892_v13, -inf }
 0x3dd   :  { %v686_v27 = vcombine.low %v1890_v12, %v1896_v18  ;;  %v687_v28 = vcombine.low %v1892_v13, %v1898_v19  ;;  %v726_v63 = vsel %vm724_vm0, %v1896_v18, -inf  ;;  %v728_v0 = vsel %vm724_vm0, %v1898_v19, -inf }
 0x3df   :  { %v694_v37 = vrot.slane %v686_v27, %v693_v24  ;;  %v701_v38 = vrot.slane %v687_v28, %v693_v24 }
 0x3e1   :  { %v630_v39 = vpop.f32.mrb[12].mxu1  ;;  %v671_v42 = vpop.f32.mrb[12].mxu0  ;;  %v702_v43 = vcombine.low %v694_v37, %v701_v38 }
 0x3e2   :  { %v631_v44 = vadd.f32 %v630_v39, %v444_v29  ;;  %v672_v46 = vadd.f32 %v671_v42, %v452_v34  ;;  %v632_v45 = vpop.f32.mrb[13].mxu1  ;;  %v673_v48 = vpop.f32.mrb[13].mxu0 }
 0x3e3   :  { %v633_v59 = vadd.f32 %v632_v45, %v448_v35  ;;  %v674_v60 = vadd.f32 %v673_v48, %v456_v36  ;;  %v634_v61 = vpop.f32.mrb[14].mxu1  ;;  %v675_v62 = vpop.f32.mrb[14].mxu0  ;;  %722 = vst [vmem:[#allocation3] sm:$0xff] %v702_v43 }
 0x3e4   :  { %v729_v53 = vsel %vm724_vm0, %v631_v44, -inf  ;;  %v733_v55 = vsel %vm724_vm0, %v672_v46, -inf  ;;  %v635_v56 = vpop.f32.mrb[15].mxu1  ;;  %v676_v57 = vpop.f32.mrb[15].mxu0 }
 0x3e5   :  { %v703_v1 = vcombine.low %v631_v44, %v633_v59  ;;  %v731_v3 = vsel %vm724_vm0, %v633_v59, -inf  ;;  %v704_v4 = vcombine.low %v672_v46, %v674_v60  ;;  %v735_v5 = vsel %vm724_vm0, %v674_v60, -inf }
 0x3e6   :  { %v730_v6 = vmax.f32 %v725_v50, %v729_v53  ;;  %v732_v7 = vmax.f32 %v726_v63, %v731_v3  ;;  %v734_v8 = vmax.f32 %v727_v58, %v733_v55  ;;  %v736_v9 = vmax.f32 %v728_v0, %v735_v5 }
 0x3e7   :  { %v711_v54 = vrot.slane %v703_v1, %v693_v24  ;;  %v718_v10 = vrot.slane %v704_v4, %v693_v24 }
 0x3e8   :  { %v737_v11 = vmax.f32 %v730_v6, %v732_v7  ;;  %v738_v14 = vmax.f32 %v734_v8, %v736_v9 }
 0x3e9   :  { %v719_v15 = vcombine.low %v711_v54, %v718_v10 }
 0x3ea   :  { %v739_v16 = vmax.f32 %v737_v11, %v738_v14 }
 0x3eb   :  { %723 = vst [vmem:[#allocation3 + $0x8] sm:$0xff] %v719_v15 }
 0x3ec   :  { %740 = vmax.xlane.f32.xlu0 %v739_v16 }
 0x3f1   :  { %v1918_v17 = vpop.f32.mrb[6].mxu0 }
 0x3f2   :  { %v1379_v20 = vpop.f32.mrb[7].mxu0 }
 0x3f5   :  { %v1920_v22 = vpop.f32.mrb[16].mxu0 }
 0x3f6   :  { %v1384_v23 = vpop.f32.mrb[17].mxu0 }
 0x479   :  { %v741_v25 = vpop.xlane.xlu0 %740 }
 0x47a   :  { %v742_v26 = vsub.f32 %v1890_v12, %v741_v25  ;;  %v743_v27 = vsub.f32 %v1896_v18, %v741_v25  ;;  %v744_v28 = vsub.f32 %v1892_v13, %v741_v25  ;;  %v745_v24 = vsub.f32 %v1898_v19, %v741_v25 }
 0x47b   :  { %v746_v29 = vsub.f32 %v631_v44, %v741_v25  ;;  %v747_v38 = vsub.f32 %v633_v59, %v741_v25  ;;  %v748_v39 = vsub.f32 %v672_v46, %v741_v25  ;;  %v749_v43 = vsub.f32 %v674_v60, %v741_v25 }
 0x47c   :  { %v750_v34 = vmul.f32 1.442695, %v742_v26  ;;  %v752_v35 = vmul.f32 1.442695, %v743_v27  ;;  %v754_v36 = vmul.f32 1.442695, %v744_v28 }
 0x47d   :  { %v756_v37 = vmul.f32 1.442695, %v745_v24  ;;  %v758_v42 = vmul.f32 1.442695, %v746_v29  ;;  %v760_v12 = vmul.f32 1.442695, %v747_v38 }
 0x47e   :  { %1586 = vpow2.f32 %v750_v34  ;;  %v762_v18 = vmul.f32 1.442695, %v748_v39  ;;  %v764_v13 = vmul.f32 1.442695, %v749_v43 }
 0x47f   :  { %1588 = vpow2.f32 %v752_v35 }
 0x480   :  { %1590 = vpow2.f32 %v754_v36 }
 0x481   :  { %1592 = vpow2.f32 %v756_v37 }
 0x482   :  { %1594 = vpow2.f32 %v758_v42 }
 0x483   :  { %1596 = vpow2.f32 %v760_v12 }
 0x484   :  { %1598 = vpow2.f32 %v762_v18 }
 0x485   :  { %1600 = vpow2.f32 %v764_v13  ;;  %v1969_v13 = vadd.s32 512, %v1734_v47 }
 0x488   :  { %v1587_v19 = vpop.eup %1586 }
 0x489   :  { %v1589_v44 = vpop.eup %1588  ;;  %v766_v45 = vsel %vm724_vm0, %v1587_v19, 0.0 }
 0x48a   :  { %v1591_v48 = vpop.eup %1590  ;;  %v767_v50 = vsel %vm724_vm0, %v1589_v44, 0.0 }
 0x48b   :  { %v1593_v58 = vpop.eup %1592  ;;  %v768_v46 = vadd.f32 %v767_v50, %v766_v45  ;;  %v769_v59 = vsel %vm724_vm0, %v1591_v48, 0.0  ;;  %v1978_v45 = vadd.s32 896, %v1734_v47 }
 0x48c   :  { %v1595_v61 = vpop.eup %1594  ;;  %v771_v62 = vsel %vm724_vm0, %v1593_v58, 0.0 }
 0x48d   :  { %v770_v60 = vadd.f32 %v769_v59, %v768_v46  ;;  %v1597_v63 = vpop.eup %1596  ;;  %v773_v53 = vsel %vm724_vm0, %v1595_v61, 0.0 }
 0x48e   :  { %v1599_v55 = vpop.eup %1598  ;;  %v775_v57 = vsel %vm724_vm0, %v1597_v63, 0.0 }
 0x48f   :  { %v772_v0 = vadd.f32 %v771_v62, %v770_v60  ;;  %v1601_v1 = vpop.eup %1600  ;;  %v777_v4 = vsel %vm724_vm0, %v1599_v55, 0.0 }
 0x490   :  { %v779_v6 = vsel %vm724_vm0, %v1601_v1, 0.0 }
 0x491   :  { %v774_v56 = vadd.f32 %v773_v53, %v772_v0 }
 0x493   :  { %v776_v3 = vadd.f32 %v775_v57, %v774_v56 }
 0x495   :  { %v778_v5 = vadd.f32 %v777_v4, %v776_v3 }
 0x497   :  { %v780_v7 = vadd.f32 %v779_v6, %v778_v5 }
 0x499   :  { %781 = vadd.xlane.f32.xlu1 %v780_v7 }
 0x526   :  { %v782_v8 = vpop.xlane.xlu1 %781 }
 0x527   :  { %1602 = vrcp.f32 %v782_v8 }
 0x531   :  { %v1603_v9 = vpop.eup %1602 }
 0x532   :  { %v1934_v54 = vmul.f32 %v1603_v9, %v1587_v19  ;;  %v1936_v10 = vmul.f32 %v1603_v9, %v1589_v44  ;;  %v1938_v11 = vmul.f32 %v1603_v9, %v1591_v48  ;;  %v1940_v14 = vmul.f32 %v1603_v9, %v1593_v58 }
 0x533   :  { %v1942_v15 = vmul.f32 %v1603_v9, %v1595_v61  ;;  %v1944_v16 = vmul.f32 %v1603_v9, %v1597_v63  ;;  %v1946_v20 = vmul.f32 %v1603_v9, %v1599_v55  ;;  %v1948_v23 = vmul.f32 %v1603_v9, %v1601_v1 }
 0x534   :  { %v792_v25 = vsel %vm724_vm0, %v1934_v54, -inf  ;;  %v793_v26 = vsel %vm724_vm0, %v1936_v10, -inf  ;;  %v794_v27 = vsel %vm724_vm0, %v1938_v11, -inf  ;;  %v795_v28 = vsel %vm724_vm0, %v1940_v14, -inf }
 0x535   :  { %v796_v24 = vsel %vm724_vm0, %v1942_v15, -inf  ;;  %v798_v29 = vsel %vm724_vm0, %v1944_v16, -inf  ;;  %v800_v34 = vsel %vm724_vm0, %v1946_v20, -inf  ;;  %v802_v35 = vsel %vm724_vm0, %v1948_v23, -inf }
 0x536   :  { %v797_v36 = vmax.f32 %v792_v25, %v796_v24  ;;  %v799_v37 = vmax.f32 %v793_v26, %v798_v29  ;;  %v801_v38 = vmax.f32 %v794_v27, %v800_v34  ;;  %v803_v39 = vmax.f32 %v795_v28, %v802_v35 }
 0x537   :  { %v1972_v19 = vadd.s32 640, %v1734_v47  ;;  %v1975_v44 = vadd.s32 768, %v1734_v47 }
 0x538   :  { %v804_v42 = vmax.f32 %v797_v36, %v799_v37  ;;  %v805_v43 = vmax.f32 %v801_v38, %v803_v39 }
 0x53a   :  { %v806_v12 = vmax.f32 %v804_v42, %v805_v43 }
 0x53c   :  { %807 = vmax.xlane.f32.xlu0 %v806_v12 }
 0x5c9   :  { %v1966_v18 = vpop.xlane.xlu0 %807 }
 0x5ca   :  { %vm809_vm7 = vcmp.gt.f32.partialorder %v1966_v18, 0.0  ;;  %vm827_vm8 = vcmp.eq.f32.partialorder %v1934_v54, %v1966_v18  ;;  %vm828_vm9 = vcmp.eq.f32.partialorder %v1936_v10, %v1966_v18  ;;  %vm829_vm10 = vcmp.eq.f32.partialorder %v1938_v11, %v1966_v18 }
 0x5cb   :  { %v1988_v48 = vsel %vm809_vm7, 1.0, %v1635_v21  ;;  %vm830_vm11 = vcmp.eq.f32.partialorder %v1940_v14, %v1966_v18  ;;  %vm831_vm12 = vcmp.eq.f32.partialorder %v1942_v15, %v1966_v18  ;;  %vm832_vm13 = vcmp.eq.f32.partialorder %v1944_v16, %v1966_v18 }
 0x5cc   :  { %v813_v50 = vsel %vm812_vm6, %v1988_v48, 0.0  ;;  %vm833_vm14 = vcmp.eq.f32.partialorder %v1946_v20, %v1966_v18  ;;  %vm834_vm15 = vcmp.eq.f32.partialorder %v1948_v23, %v1966_v18  ;;  %v835_v58 = vsel %vm827_vm8, %v1734_v47, 1024 }
 0x5cd   :  { %814 = vadd.xlane.f32.xlu0 %v813_v50  ;;  %v836_v46 = vsel %vm828_vm9, %v1738_v49, 1024  ;;  %v837_v59 = vsel %vm829_vm10, %v1744_v52, 1024  ;;  %v838_v61 = vsel %vm830_vm11, %v1741_v51, 1024  ;;  %v839_v60 = vsel %vm831_vm12, %v1969_v13, 1024 }
 0x5ce   :  { %v840_v62 = vsel %vm832_vm13, %v1972_v19, 1024  ;;  %v841_v63 = vsel %vm833_vm14, %v1975_v44, 1024  ;;  %v842_v0 = vsel %vm834_vm15, %v1978_v45, 1024  ;;  %v843_v53 = vsel %vm724_vm0, %v835_v58, 2147483647 }
 0x5cf   :  { %v844_v55 = vsel %vm724_vm0, %v836_v46, 2147483647  ;;  %v845_v56 = vsel %vm724_vm0, %v837_v59, 2147483647  ;;  %v846_v57 = vsel %vm724_vm0, %v838_v61, 2147483647  ;;  %v932_v58 = vunpack.c.h.bf16 %v1815_v32 }
 0x5d0   :  { %v847_v1 = vsel %vm724_vm0, %v839_v60, 2147483647  ;;  %v850_v3 = vsel %vm724_vm0, %v840_v62, 2147483647  ;;  %v853_v4 = vsel %vm724_vm0, %v841_v63, 2147483647 }
 0x5d1   :  { %vm848_vm1 = vcmp.lt.s32.totalorder %v843_v53, %v847_v1  ;;  %vm851_vm3 = vcmp.lt.s32.totalorder %v844_v55, %v850_v3  ;;  %vm854_vm4 = vcmp.lt.s32.totalorder %v845_v56, %v853_v4  ;;  %v856_v5 = vsel %vm724_vm0, %v842_v0, 2147483647  ;;  %1003 = vmatprep.mubr.f32.mxu1 %v932_v58 }
 0x5d2   :  { %v849_v6 = vsel %vm848_vm1, %v843_v53, %v847_v1  ;;  %v852_v7 = vsel %vm851_vm3, %v844_v55, %v850_v3  ;;  %v855_v8 = vsel %vm854_vm4, %v845_v56, %v853_v4  ;;  %vm857_vm5 = vcmp.lt.s32.totalorder %v846_v57, %v856_v5 }
 0x5d3   :  { %v858_v9 = vsel %vm857_vm5, %v846_v57, %v856_v5  ;;  %vm859_vm6 = vcmp.lt.s32.totalorder %v849_v6, %v852_v7  ;;  %v909_v61 = vadd.f32 1e-10, %v1966_v18  ;;  %vm1387_vm3 = vcmask 15360  }
 0x5d4   :  { %v860_v25 = vsel %vm859_vm6, %v849_v6, %v852_v7  ;;  %vm861_vm7 = vcmp.lt.s32.totalorder %v855_v8, %v858_v9 }
 0x5d5   :  { %v862_v26 = vsel %vm861_vm7, %v855_v8, %v858_v9 }
 0x5d6   :  { %vm863_vm8 = vcmp.lt.s32.totalorder %v860_v25, %v862_v26 }
 0x5d7   :  { %v864_v27 = vsel %vm863_vm8, %v860_v25, %v862_v26  ;;  %v931_v26 = vunpack.c.l.bf16 %v1815_v32 }
 0x5d8   :  { %v866_v28 = vshra.s32 %v864_v27, 16  ;;  %v865_v42 = vand.u32 65535, %v864_v27 }
 0x5da   :  { %v868_v24 = vcvt.s32.f32 %v866_v28  ;;  %v867_v12 = vcvt.s32.f32 %v865_v42  ;;  %v1639_v42 = vmov 3  }
 0x5db   :  { %1557 = vset.pattern.permute.xlu1 %v1639_v42 }
 0x5dc   :  { %869 = vmin.xlane.f32.xlu0 %v868_v24 }
 0x65a   :  { %v815_v29 = vpop.xlane.xlu0 %814 }
 0x65b   :  { %v816_v34 = vrot.slane %v815_v29, 4 }
 0x65d   :  { %v817_v35 = vadd.f32 %v816_v34, %v815_v29 }
 0x65f   :  { %v818_v36 = vrot.slane %v817_v35, 2 }
 0x661   :  { %v819_v37 = vadd.f32 %v818_v36, %v817_v35 }
 0x663   :  { %v820_v38 = vrot.slane %v819_v37, 1 }
 0x665   :  { %v821_v39 = vadd.f32 %v820_v38, %v819_v37 }
 0x667   :  { %1540 = vpush %v821_v39  ;;  %v1638_v39 = vmov 2  }
 0x668   :  { %1556 = vset.pattern.permute.xlu0 %v1638_v39 }
 0x669   :  { %v870_v43 = vpop.xlane.xlu0 %869 }
 0x66a   :  { %vm871_vm0 = vcmp.eq.f32.partialorder %v868_v24, %v870_v43  ;;  %v876_v60 = vcvt.f32.s32 %v870_v43 }
 0x66b   :  { %v872_v50 = vsel %vm871_vm0, %v867_v12, inf }
 0x66c   :  { %873 = vmin.xlane.f32.xlu0 %v872_v50  ;;  %v877_v53 = vshll.u32 %v876_v60, 16 }
 0x698   :  { %s2018_s3 = spop %1540 }
 0x699   :  { %s904_s8 = smax.f32 %s1637_s7, %s2018_s3  ;;  %p903_p0 = scmp.gt.f32.partialorder %s2018_s3, 0.0 }
 0x69a   :  { %v905_v46 = vstv %s904_s8 }
 0x69b   :  { %1604 = vrcp.f32 %v905_v46  ;;  %s1395_s10 = scalar_select %p903_p0, 1, 0 }
 0x69c   :  { %1606 = vrcp.f32 %v909_v61 }
 0x69d   :  { %s1396_s11 = scvt.s32.f32 %s1395_s10 }
 0x69f   :  { %s1397_s12 = ssub.f32 1.0, %s1396_s11  ;;  %s1408_s13 = smul.f32 0.01, %s1396_s11 }
 0x6a1   :  { %v1398_v43 = vstv %s1397_s12  ;;  %v1409_v60 = vstv %s1408_s13 }
 0x6a5   :  { %v1605_v59 = vpop.eup %1604 }
 0x6a6   :  { %1542 = vpush %v1605_v59  ;;  %v1607_v0 = vpop.eup %1606 }
 0x6a7   :  { %v911_v1 = vmul.f32 %v1607_v0, %v1966_v18 }
 0x6d7   :  { %s1543_s9 = spop %1542 }
 0x6d8   :  { %s2111_s9 = smov (!%p903_p0, %s1543_s9), 0.0 }
 0x6d9   :  { %v912_v62 = vstv %s2111_s9 }
 0x6da   :  { %v913_v56 = vmul.f32 %v1988_v48, %v912_v62 }
 0x6dc   :  { %v914_v3 = vmul.f32 %v913_v56, %v911_v1 }
 0x6f9   :  { %v874_v63 = vpop.xlane.xlu0 %873 }
 0x6fa   :  { %v875_v55 = vcvt.f32.s32 %v874_v63 }
 0x6fc   :  { %v878_v57 = vadd.s32 %v877_v53, %v875_v55 }
 0x6fe   :  { %vm880_vm9 = vcmp.eq.s32.totalorder %v1738_v49, %v878_v57  ;;  %vm879_vm10 = vcmp.eq.s32.totalorder %v1734_v47, %v878_v57  ;;  %vm882_vm11 = vcmp.eq.s32.totalorder %v1741_v51, %v878_v57  ;;  %vm881_vm12 = vcmp.eq.s32.totalorder %v1744_v52, %v878_v57 }
 0x6ff   :  { %v1510_v4 = vsel %vm880_vm9, 1.0, %v1635_v21  ;;  %v1509_v5 = vsel %vm879_vm10, 1.0, %v1635_v21  ;;  %v1512_v6 = vsel %vm882_vm11, 1.0, %v1635_v21  ;;  %v1511_v49 = vsel %vm881_vm12, 1.0, %v1635_v21 }
 0x700   :  { %v916_v48 = vsub.f32 %v1936_v10, %v1510_v4  ;;  %v915_v7 = vsub.f32 %v1934_v54, %v1509_v5  ;;  %v918_v18 = vsub.f32 %v1940_v14, %v1512_v6  ;;  %vm884_vm13 = vcmp.eq.s32.totalorder %v1972_v19, %v878_v57 }
 0x701   :  { %v917_v52 = vsub.f32 %v1938_v11, %v1511_v49  ;;  %v1514_v9 = vsel %vm884_vm13, 1.0, %v1635_v21  ;;  %v934_v54 = vunpack.c.h.bf16 %v1820_v33  ;;  %vm883_vm14 = vcmp.eq.s32.totalorder %v1969_v13, %v878_v57 }
 0x702   :  { %v924_v51 = vmul.f32 %v916_v48, %v914_v3  ;;  %v923_v8 = vmul.f32 %v915_v7, %v914_v3  ;;  %v926_v25 = vmul.f32 %v918_v18, %v914_v3  ;;  %v920_v10 = vsub.f32 %v1944_v16, %v1514_v9 }
 0x703   :  { %vm886_vm15 = vcmp.eq.s32.totalorder %v1978_v45, %v878_v57  ;;  %v925_v14 = vmul.f32 %v917_v52, %v914_v3  ;;  %v1513_v11 = vsel %vm883_vm14, 1.0, %v1635_v21  ;;  %v933_v16 = vunpack.c.l.bf16 %v1820_v33 }
 0x704   :  { %939 = vmatprep.subr.mxu1 %v924_v51  ;;  %v928_v19 = vmul.f32 %v920_v10, %v914_v3  ;;  %v1516_v27 = vsel %vm886_vm15, 1.0, %v1635_v21  ;;  %v919_v32 = vsub.f32 %v1942_v15, %v1513_v11  ;;  %v936_v13 = vunpack.c.h.bf16 %v1842_v41 }
 0x705   :  { %940 = vmatpush1.xpose.msra.mxu1 %v923_v8  ;;  %v922_v28 = vsub.f32 %v1948_v23, %v1516_v27  ;;  %vm885_vm1 = vcmp.eq.s32.totalorder %v1975_v44, %v878_v57  ;;  %v935_v15 = vunpack.c.l.bf16 %v1842_v41  ;;  %v938_v33 = vunpack.c.h.bf16 %v1837_v40 }
 0x706   :  { %1009 = vmatprep.subr.mxu1 %v926_v25  ;;  %v927_v45 = vmul.f32 %v919_v32, %v914_v3  ;;  %v1515_v29 = vsel %vm885_vm1, 1.0, %v1635_v21  ;;  %v937_v23 = vunpack.c.l.bf16 %v1837_v40  ;;  %v1400_v40 = vmul.f32 0.9, %v1727_v30 }
 0x707   :  { %v930_v24 = vmul.f32 %v922_v28, %v914_v3  ;;  %v921_v34 = vsub.f32 %v1946_v20, %v1515_v29 }
 0x708   :  { %1004 = vmatmul.mubr.f32.vlgmr.msra.gmra.mrb[6].mxu1 %v931_v26 }
 0x709   :  { %1010 = vmatpush1.xpose.msra.mxu1 %v925_v14  ;;  %1073 = vmatprep.mubr.f32.mxu1 %v934_v54  ;;  %v929_v35 = vmul.f32 %v921_v34, %v914_v3 }
 0x70a   :  { %1079 = vmatprep.subr.mxu1 %v928_v19 }
 0x710   :  { %1074 = vmatmul.mubr.f32.vlgmr.msra.gmra.mrb[6].mxu1 %v933_v16 }
 0x711   :  { %1080 = vmatpush1.xpose.msra.mxu1 %v927_v45  ;;  %1143 = vmatprep.mubr.f32.mxu1 %v936_v13 }
 0x712   :  { %1149 = vmatprep.subr.mxu1 %v930_v24 }
 0x718   :  { %1144 = vmatmul.mubr.f32.vlgmr.msra.gmra.mrb[6].mxu1 %v935_v15 }
 0x719   :  { %1150 = vmatpush1.xpose.msra.mxu1 %v929_v35  ;;  %1213 = vmatprep.mubr.f32.mxu1 %v938_v33 }
 0x720   :  { %1214 = vmatmul.mubr.f32.vlgmr.msra.gmra.mrb[6].mxu1 %v937_v23 }
 0x7f3   :  { %v1215_v44 = vpop.f32.mrb[6].mxu1 }
 0x7f4   :  { %v1219_v36 = vmul.f32 0.00390625, %v1215_v44  ;;  %v1217_v21 = vpop.f32.mrb[7].mxu1 }
 0x7f6   :  { %v1391_v37 = vmul.f32 %v1920_v22, %v1219_v36  ;;  %v1386_v20 = vmul.f32 %v1918_v17, %v1219_v36  ;;  %v1402_v22 = vstv %s1396_s11  ;;  %v1399_v17 = vmul.f32 %v1398_v43, %v1727_v30 }
 0x7f8   :  { %v1392_v38 = vsel %vm1387_vm3, %v1391_v37, 0.0  ;;  %v1388_v41 = vsel %vm1387_vm3, %v1386_v20, 0.0 }
 0x7f9   :  { %1393 = vadd.xlane.f32.xlu0 %v1392_v38 }
 0x7fd   :  { %1389 = vadd.xlane.f32.xlu0 %v1388_v41 }
 0x886   :  { %v1394_v12 = vpop.xlane.xlu0 %1393 }
 0x887   :  { %v1405_v50 = vadd.f32 %v1400_v40, %v1394_v12 }
 0x889   :  { %v1406_v58 = vmul.f32 %v1405_v50, %v1402_v22 }
 0x88a   :  { %v1390_v46 = vpop.xlane.xlu0 %1389 }
 0x88b   :  { %v1407_v59 = vadd.f32 %v1406_v58, %v1399_v17  ;;  %v1401_v61 = vadd.f32 %v1400_v40, %v1390_v46 }
 0x88d   :  { %v1403_v62 = vmul.f32 %v1402_v22, %v1401_v61  ;;  %v1416_v63 = vmul.f32 %v1409_v60, %v1407_v59 }
 0x88f   :  { %1418 = vrot.lane.b32.xlu0 %v1416_v63, %s1640_s14  ;;  %v1404_v0 = vadd.f32 %v1403_v62, %v1399_v17 }
 0x891   :  { %v1410_v53 = vmul.f32 %v1409_v60, %v1404_v0 }
 0x893   :  { %1427 = vperm.xlu0 %1556, %v1404_v0   ;;  %1412 = vrot.lane.b32.xlu1 %v1410_v53, %s1640_s14 }
 0x897   :  { %1432 = vperm.xlu1 %1557, %v1407_v59   ;;  %1559 = vset.pattern.permute.xlu0 %v1632_v2 }
 0x89b   :  { %1558 = vset.pattern.permute.xlu1 %v1633_v31 }
 0x901   :  { %v1419_v55 = vpop.permute.xlu0 %1418 }
 0x902   :  { %v1421_v56 = vsub.f32 %v1727_v30, %v1419_v55 }
 0x904   :  { %1438 = vperm.xlu1 %1558, %v1421_v56  }
 0x905   :  { %v1413_v57 = vpop.permute.xlu1 %1412 }
 0x906   :  { %v1415_v1 = vsub.f32 %v1727_v30, %v1413_v57 }
 0x908   :  { %1444 = vperm.xlu0 %1559, %v1415_v1  }
 0x909   :  { %1619 = shalt.err (!%p1616_p5)
}
 0x90a   :  { %s1620_s19 = scalar_lea.hbm %s2092_s5, 256 }
 0x90b   :  { %p1621_p6 = scmp.ne.s32.totalorder %s2092_s5, %s1620_s19  ;;  %p1624_p7 = scmp.lt.u32.totalorder %s1620_s19, %s2092_s5 }
 0x90d   :  { %p1626_p8 = pnand %p1624_p7, %p1621_p6 }
 0x90f   :  { %1629 = shalt.err (!%p1626_p8)
}
 0x910   :  { %1459 = dma.vmem_to_hbm [thread:$0]  %s1457_s16, 256, %s2092_s5, [#allocation4]   ;;  %vm1424_vm4 = vcmp.eq.s32.totalorder %v1734_v47, 2  ;;  %vm1423_vm5 = vcmp.eq.s32.totalorder %v1734_v47, 1  ;;  %vm1422_vm6 = vcmp.eq.s32.totalorder %v1734_v47, 0 }
 0x912   :  { %v1428_v30 = vpop.permute.xlu0 %1427 }
 0x916   :  { %v1433_v2 = vpop.permute.xlu1 %1432 }
 0x917   :  { %v1435_v3 = vsel %vm1424_vm4, %v1428_v30, %v1433_v2 }
 0x983   :  { %v1439_v31 = vpop.permute.xlu1 %1438 }
 0x984   :  { %v1441_v4 = vsel %vm1423_vm5, %v1439_v31, %v1435_v3 }
 0x987   :  { %v1445_v5 = vpop.permute.xlu0 %1444 }
 0x988   :  { %v1447_v6 = vsel %vm1422_vm6, %v1445_v5, %v1441_v4 }
 0x989   :  { %1449 = vst.msk [vmem:[%s2093_s6] sm:$0xff] %vm220_vm2, %v1447_v6 }
 0x98a   :  { %1630 = dma.done.wait [#allocation4], 256  }
 0x98b   :  { %1631 = vsyncadd [#allocation4], 4294967040 }
 0x98c   :  { %1467 = vsyncpa [#allocation4], 1 }

</bundles_post_ra>
